<compile_context>
chip_gen: v5e
topology: v5e:2x2
jax: 0.10.0
libtpu: 0.0.40
codegen_flags: <defaults>
</compile_context>

<pallas_src>
import jax
import jax.numpy as jnp
from jax.experimental import pallas as pl
from jax.experimental.pallas import tpu as pltpu

_LANES = 128
_SUBLANES = 8


def _round_up(x, m):
    return ((x + m - 1) // m) * m


def _device_budgets():
    """Return (scratch/temporary VMEM budget, vmem_limit_bytes, num_shards)."""
    kind = ""
    try:
        kind = jax.devices()[0].device_kind.lower()
    except Exception:
        pass
    if "v7" in kind or "7x" in kind:
        # v7x: 64 MiB VMEM per TensorCore, 2 TensorCores per chip.
        return 20 << 20, 40 << 20, 2
    # v5e / v6e (and other 128 MiB-VMEM parts): single TensorCore.
    return 48 << 20, 80 << 20, 1


# --------------------------------------------------------------------------
# Kernel 1: fused gather (small vocabulary).  Tables are VMEM-resident,
# gather happens via one-hot matmul on the MXU.  Table layout (feature-major,
# augmented):
#   center table rows:  [E embedding dims | center_bias | ones ]
#   outside table rows: [E embedding dims | ones        | outside_bias]
# so the column-sum of (gathered_center * gathered_outside) equals
#   inner_product + center_bias + outside_bias.
# --------------------------------------------------------------------------
def _glove_fused_kernel(idx_ref, aux_ref, ct_ref, ot_ref, out_ref):
    i = pl.program_id(1)

    @pl.when(i == 0)
    def _init():
        out_ref[...] = jnp.zeros_like(out_ref)

    idx = idx_ref[...]                                    # [2, tb] int32
    aux = aux_ref[...]                                    # [2, tb] f32 (cooc, w)
    vp = ct_ref.shape[1]
    tb = idx.shape[1]

    vocab_iota = jax.lax.broadcasted_iota(jnp.int32, (vp, tb), 0)
    oh_c = (vocab_iota == idx[0:1, :]).astype(jnp.float32)     # [Vp, tb]
    oh_o = (vocab_iota == idx[1:2, :]).astype(jnp.float32)     # [Vp, tb]

    # Gather-by-matmul on the idle MXU; exact for 0/1 one-hot weights.
    ce = jnp.dot(ct_ref[...], oh_c, preferred_element_type=jnp.float32)  # [E2p, tb]
    oe = jnp.dot(ot_ref[...], oh_o, preferred_element_type=jnp.float32)  # [E2p, tb]

    s = jnp.sum(ce * oe, axis=0, keepdims=True)           # inner + b_c + b_o, [1, tb]
    diff = s - aux[0:1, :]                                 # - cooc
    contrib = aux[1:2, :] * diff * diff                    # weighting * diff^2
    out_ref[...] += jnp.sum(contrib, keepdims=True)        # [1, 1] partial


# --------------------------------------------------------------------------
# Kernel 2: streaming fallback (large vocabulary).  Gather stays in the
# wrapper; gathered embeddings are streamed feature-major [E, B] (lane-dense).
# aux row 0 = b_c + b_o - cooc, row 1 = weighting.
# --------------------------------------------------------------------------
def _glove_stream_kernel(ce_ref, oe_ref, aux_ref, out_ref):
    i = pl.program_id(1)

    @pl.when(i == 0)
    def _init():
        out_ref[...] = jnp.zeros_like(out_ref)

    ce = ce_ref[...].astype(jnp.float32)                   # [E, tb]
    oe = oe_ref[...].astype(jnp.float32)                   # [E, tb]
    aux = aux_ref[...]                                     # [2, tb]

    s = jnp.sum(ce * oe, axis=0, keepdims=True)            # [1, tb]
    diff = s + aux[0:1, :]
    contrib = aux[1:2, :] * diff * diff
    out_ref[...] += jnp.sum(contrib, keepdims=True)        # [1, 1] partial


def glove_forward(params, center, outside, coocs, weighting, *,
                  max_tb=16384, num_shards=None, force_streaming=False,
                  stream_dtype=None):
    """Scalar GloVe loss. center/outside int [B] or [B,1]; coocs/weighting [B] or [B,1]."""
    idx_c = jnp.asarray(center).reshape(-1).astype(jnp.int32)
    idx_o = jnp.asarray(outside).reshape(-1).astype(jnp.int32)
    cooc = jnp.asarray(coocs, jnp.float32).reshape(-1)
    w = jnp.asarray(weighting, jnp.float32).reshape(-1)

    B = idx_c.shape[0]
    V, E = params["center_embedding"].shape

    temp_budget, vmem_limit, default_shards = _device_budgets()
    num_shards = max(1, int(default_shards if num_shards is None else num_shards))

    # ---- path selection + VMEM-budgeted batch tile (lane axis) --------------
    e2 = E + 2                                   # embedding dims + bias + ones
    e2p = _round_up(e2, _SUBLANES)
    vp = _round_up(V, _SUBLANES)
    table_bytes = 2 * 2 * e2p * vp * 4           # 2 tables, double-buffered
    fused_ok = ((not force_streaming)
                and V <= max(512, 4 * E)          # one-hot cost ~O(V) per row
                and table_bytes <= temp_budget // 2)

    if fused_ok:
        # per-row VMEM: idx+aux (x2 buffers) + one-hots + gathered temporaries
        per_row = 2 * (2 + 2) * 4 + 2 * vp * 4 + 3 * e2p * 4 + 64
        tb_budget = (temp_budget - table_bytes) // per_row
    else:
        elem_bytes = 2 if stream_dtype == jnp.bfloat16 else 4
        # per-row VMEM: 2 embedding streams (x2 buffers) + aux + f32 temporaries
        per_row = 2 * E * elem_bytes * 2 + 2 * 4 * 2 + (E + 8) * 4 + 64
        tb_budget = temp_budget // per_row

    tb = min(max_tb, tb_budget, _round_up(B, _LANES))
    tb = max(_LANES, (tb // _LANES) * _LANES)

    Bp = _round_up(B, num_shards * tb)
    pad = Bp - B
    if pad:
        idx_c = jnp.pad(idx_c, (0, pad))
        idx_o = jnp.pad(idx_o, (0, pad))
        cooc = jnp.pad(cooc, (0, pad))
        w = jnp.pad(w, (0, pad))                  # weight 0 => no contribution
    tiles_per_shard = Bp // (num_shards * tb)

    bidx = lambda c, i: (0, c * tiles_per_shard + i)
    out_spec = pl.BlockSpec((None, 1, 1), lambda c, i: (c, 0, 0))
    cparams = pltpu.CompilerParams(
        dimension_semantics=("parallel", "arbitrary"),
        vmem_limit_bytes=int(vmem_limit),
    )

    if fused_ok:
        ones = jnp.ones((V, 1), jnp.float32)
        ct = jnp.concatenate(
            [params["center_embedding"].astype(jnp.float32),
             params["center_bias"].astype(jnp.float32).reshape(V, 1),
             ones], axis=1).T                                   # [E+2, V]
        ot = jnp.concatenate(
            [params["outside_embedding"].astype(jnp.float32),
             ones,
             params["outside_bias"].astype(jnp.float32).reshape(V, 1)],
            axis=1).T                                           # [E+2, V]
        ct = jnp.pad(ct, ((0, e2p - e2), (0, vp - V)))          # zero rows/cols
        ot = jnp.pad(ot, ((0, e2p - e2), (0, vp - V)))

        idx = jnp.stack([idx_c, idx_o], axis=0)                 # [2, Bp] int32
        aux = jnp.stack([cooc, w], axis=0)                      # [2, Bp] f32

        partials = pl.pallas_call(
            _glove_fused_kernel,
            out_shape=jax.ShapeDtypeStruct((num_shards, 1, 1), jnp.float32),
            grid_spec=pltpu.PrefetchScalarGridSpec(
                num_scalar_prefetch=0,
                grid=(num_shards, tiles_per_shard),
                in_specs=[
                    pl.BlockSpec((2, tb), bidx),                       # indices
                    pl.BlockSpec((2, tb), bidx),                       # cooc / w
                    pl.BlockSpec((e2p, vp), lambda c, i: (0, 0)),      # center tbl
                    pl.BlockSpec((e2p, vp), lambda c, i: (0, 0)),      # outside tbl
                ],
                out_specs=out_spec,
            ),
            compiler_params=cparams,
        )(idx, aux, ct, ot)
        return jnp.sum(partials)

    # ---- streaming fallback (large vocabulary) -------------------------------
    s_dtype = jnp.float32 if stream_dtype is None else stream_dtype
    ctT = params["center_embedding"].astype(s_dtype).T          # [E, V]
    otT = params["outside_embedding"].astype(s_dtype).T
    ceT = jnp.take(ctT, idx_c, axis=1)                          # [E, Bp] feature-major
    oeT = jnp.take(otT, idx_o, axis=1)
    cb = params["center_bias"].astype(jnp.float32).reshape(-1)[idx_c]
    ob = params["outside_bias"].astype(jnp.float32).reshape(-1)[idx_o]
    aux = jnp.stack([cb + ob - cooc, w], axis=0)                # [2, Bp]
    # TODO(synk): replace the XLA-side gather with an in-kernel manual DMA gather
    # (memory_space=pl.ANY + scalar-prefetched indices) to avoid the HBM round
    # trip of the gathered [E, Bp] streams for very large vocabularies.

    partials = pl.pallas_call(
        _glove_stream_kernel,
        out_shape=jax.ShapeDtypeStruct((num_shards, 1, 1), jnp.float32),
        grid_spec=pltpu.PrefetchScalarGridSpec(
            num_scalar_prefetch=0,
            grid=(num_shards, tiles_per_shard),
            in_specs=[
                pl.BlockSpec((E, tb), bidx),
                pl.BlockSpec((E, tb), bidx),
                pl.BlockSpec((2, tb), bidx),
            ],
            out_specs=out_spec,
        ),
        compiler_params=cparams,
    )(ceT, oeT, aux)
    return jnp.sum(partials)


if __name__ == "__main__":
    key = jax.random.PRNGKey(0)
    voc_size, emb_size, batch = 50, 32, 16
    k1, k2, k3, k4, k5, k6, k7, k8 = jax.random.split(key, 8)

    params = {
        "center_embedding": jax.random.normal(k1, (voc_size, emb_size), jnp.float32),
        "outside_embedding": jax.random.normal(k2, (voc_size, emb_size), jnp.float32),
        "center_bias": jax.random.normal(k3, (voc_size, 1), jnp.float32),
        "outside_bias": jax.random.normal(k4, (voc_size, 1), jnp.float32),
    }

    center = jax.random.randint(k5, (batch, 1), 0, voc_size, jnp.int32)
    outside = jax.random.randint(k6, (batch, 1), 0, voc_size, jnp.int32)
    coocs = jax.random.uniform(k7, (batch, 1), jnp.float32, 0.0, 5.0)
    weighting = jax.random.uniform(k8, (batch, 1), jnp.float32, 0.0, 1.0)

    # Pure-JAX reference.
    ce = params["center_embedding"][center[:, 0]]
    oe = params["outside_embedding"][outside[:, 0]]
    cb = params["center_bias"][center[:, 0]]
    ob = params["outside_bias"][outside[:, 0]]
    ip = jnp.sum(ce * oe, axis=1, keepdims=True)
    ref = jnp.sum(weighting * (ip + cb + ob - coocs) ** 2)

    # Fused (VMEM-resident table, one-hot MXU gather) path.
    loss_fused = glove_forward(params, center, outside, coocs, weighting)
    jax.block_until_ready(loss_fused)
    assert jnp.allclose(loss_fused, ref, rtol=1e-4, atol=1e-4), (loss_fused, ref)

    # Streaming fallback path (large-vocab configuration), forced for coverage.
    loss_stream = glove_forward(params, center, outside, coocs, weighting,
                                force_streaming=True)
    jax.block_until_ready(loss_stream)
    assert jnp.allclose(loss_stream, ref, rtol=1e-4, atol=1e-4), (loss_stream, ref)

    print("KERNEL_OK")
</pallas_src>

<mosaic_0001>
module attributes {stable_mosaic.version = 11 : i64} {
  func.func @_glove_fused_kernel(%arg0: i32, %arg1: i32, %arg2: memref<2x128xi32, #tpu.memory_space<vmem>>, %arg3: memref<2x128xf32, #tpu.memory_space<vmem>>, %arg4: memref<40x56xf32, #tpu.memory_space<vmem>>, %arg5: memref<40x56xf32, #tpu.memory_space<vmem>>, %arg6: memref<1x1x1xf32, #tpu.memory_space<vmem>>) attributes {dimension_semantics = [#tpu.dimension_semantics<parallel>, #tpu.dimension_semantics<arbitrary>], iteration_bounds = array<i64: 1, 1>, scalar_prefetch = 0 : i64, scratch_operands = 0 : i64, tpu.core_type = #tpu.core_type<tc>, window_params = [{transform_indices = @transform_0, window_bounds = array<i64: 2, 128>}, {transform_indices = @transform_1, window_bounds = array<i64: 2, 128>}, {pipeline_mode = #tpu.pipeline_mode<synchronous>, transform_indices = @transform_2, window_bounds = array<i64: 40, 56>}, {pipeline_mode = #tpu.pipeline_mode<synchronous>, transform_indices = @transform_3, window_bounds = array<i64: 40, 56>}, {transform_indices = @transform_4, window_bounds = array<i64: 1, 1, 1>}]} {
    %c0_i32 = arith.constant 0 : i32
    %0 = arith.cmpi eq, %arg1, %c0_i32 : i32
    %1 = arith.extui %0 : i1 to i32
    %c0_i32_0 = arith.constant 0 : i32
    %2 = arith.cmpi ne, %1, %c0_i32_0 : i32
    scf.if %2 {
      %cst_17 = arith.constant 0.000000e+00 : f32
      %39 = vector.broadcast %cst_17 : f32 to vector<1x1xf32>
      %c0_18 = arith.constant 0 : index
      %c0_19 = arith.constant 0 : index
      %c0_20 = arith.constant 0 : index
      %40 = vector.load %arg6[%c0_18, %c0_19, %c0_20] : memref<1x1x1xf32, #tpu.memory_space<vmem>>, vector<1x1x1xf32>
      %41 = vector.shape_cast %40 : vector<1x1x1xf32> to vector<1x1xf32>
      %42 = vector.shape_cast %39 : vector<1x1xf32> to vector<1x1x1xf32>
      tpu.vector_store %arg6[%c0_18, %c0_19, %c0_20], %42 {strides = array<i32>} : memref<1x1x1xf32, #tpu.memory_space<vmem>>, vector<1x1x1xf32>,
    } else {
    }
    %c0 = arith.constant 0 : index
    %c0_1 = arith.constant 0 : index
    %3 = vector.load %arg2[%c0, %c0_1] : memref<2x128xi32, #tpu.memory_space<vmem>>, vector<2x128xi32>
    %c0_2 = arith.constant 0 : index
    %c0_3 = arith.constant 0 : index
    %4 = vector.load %arg3[%c0_2, %c0_3] : memref<2x128xf32, #tpu.memory_space<vmem>>, vector<2x128xf32>
    %5 = tpu.iota {dimensions = array<i32: 0>} : vector<56x128xi32>
    %6 = vector.extract_strided_slice %3 {offsets = [0, 0], sizes = [1, 128], strides = [1, 1]} : vector<2x128xi32> to vector<1x128xi32>
    %7 = vector.broadcast %6 : vector<1x128xi32> to vector<56x128xi32>
    %8 = arith.cmpi eq, %5, %7 : vector<56x128xi32>
    %9 = arith.extui %8 : vector<56x128xi1> to vector<56x128xi32>
    %10 = arith.sitofp %9 : vector<56x128xi32> to vector<56x128xf32>
    %11 = vector.extract_strided_slice %3 {offsets = [1, 0], sizes = [1, 128], strides = [1, 1]} : vector<2x128xi32> to vector<1x128xi32>
    %12 = vector.broadcast %11 : vector<1x128xi32> to vector<56x128xi32>
    %13 = arith.cmpi eq, %5, %12 : vector<56x128xi32>
    %14 = arith.extui %13 : vector<56x128xi1> to vector<56x128xi32>
    %15 = arith.sitofp %14 : vector<56x128xi32> to vector<56x128xf32>
    %c0_4 = arith.constant 0 : index
    %c0_5 = arith.constant 0 : index
    %16 = vector.load %arg4[%c0_4, %c0_5] : memref<40x56xf32, #tpu.memory_space<vmem>>, vector<40x56xf32>
    %cst = arith.constant dense<0.000000e+00> : vector<40x128xf32>
    %17 = tpu.matmul %16, %10, %cst {dimension_numbers = #tpu.dot_dimension_numbers<[1], [0], [0], [1], [0, 0, 1, 1], [], []>} : vector<40x56xf32>, vector<56x128xf32>, vector<40x128xf32> -> vector<40x128xf32>
    %c0_6 = arith.constant 0 : index
    %c0_7 = arith.constant 0 : index
    %18 = vector.load %arg5[%c0_6, %c0_7] : memref<40x56xf32, #tpu.memory_space<vmem>>, vector<40x56xf32>
    %cst_8 = arith.constant dense<0.000000e+00> : vector<40x128xf32>
    %19 = tpu.matmul %18, %15, %cst_8 {dimension_numbers = #tpu.dot_dimension_numbers<[1], [0], [0], [1], [0, 0, 1, 1], [], []>} : vector<40x56xf32>, vector<56x128xf32>, vector<40x128xf32> -> vector<40x128xf32>
    %20 = arith.mulf %17, %19 : vector<40x128xf32>
    %cst_9 = arith.constant dense<0.000000e+00> : vector<128xf32>
    %21 = vector.multi_reduction <add>, %20, %cst_9 [0] : vector<40x128xf32> to vector<128xf32>
    %22 = vector.shape_cast %21 : vector<128xf32> to vector<1x128xf32>
    %23 = vector.extract_strided_slice %4 {offsets = [0, 0], sizes = [1, 128], strides = [1, 1]} : vector<2x128xf32> to vector<1x128xf32>
    %24 = arith.subf %22, %23 : vector<1x128xf32>
    %25 = vector.extract_strided_slice %4 {offsets = [1, 0], sizes = [1, 128], strides = [1, 1]} : vector<2x128xf32> to vector<1x128xf32>
    %26 = arith.mulf %25, %24 : vector<1x128xf32>
    %27 = arith.mulf %26, %24 : vector<1x128xf32>
    %c0_10 = arith.constant 0 : index
    %c0_11 = arith.constant 0 : index
    %c0_12 = arith.constant 0 : index
    %28 = vector.load %arg6[%c0_10, %c0_11, %c0_12] : memref<1x1x1xf32, #tpu.memory_space<vmem>>, vector<1x1x1xf32>
    %29 = vector.shape_cast %28 : vector<1x1x1xf32> to vector<1x1xf32>
    %30 = vector.shape_cast %27 : vector<1x128xf32> to vector<1x1x128xf32>
    %cst_13 = arith.constant dense<0.000000e+00> : vector<1xf32>
    %31 = vector.multi_reduction <add>, %30, %cst_13 [1, 2] : vector<1x1x128xf32> to vector<1xf32>
    %32 = vector.shape_cast %31 : vector<1xf32> to vector<1x1x1xf32>
    %33 = vector.extract %32[0, 0, 0] : f32 from vector<1x1x1xf32>
    %34 = vector.broadcast %33 : f32 to vector<1x1xf32>
    %35 = arith.addf %29, %34 : vector<1x1xf32>
    %c0_14 = arith.constant 0 : index
    %c0_15 = arith.constant 0 : index
    %c0_16 = arith.constant 0 : index
    %36 = vector.load %arg6[%c0_14, %c0_15, %c0_16] : memref<1x1x1xf32, #tpu.memory_space<vmem>>, vector<1x1x1xf32>
    %37 = vector.shape_cast %36 : vector<1x1x1xf32> to vector<1x1xf32>
    %38 = vector.shape_cast %35 : vector<1x1xf32> to vector<1x1x1xf32>
    tpu.vector_store %arg6[%c0_14, %c0_15, %c0_16], %38 {strides = array<i32>} : memref<1x1x1xf32, #tpu.memory_space<vmem>>, vector<1x1x1xf32>,
    return
  }
  func.func @transform_0(%arg0: i32, %arg1: i32) -> (i32, i32) {
    %c1_i32 = arith.constant 1 : i32
    %0 = arith.muli %arg0, %c1_i32 : i32
    %1 = arith.addi %0, %arg1 : i32
    %c0_i32 = arith.constant 0 : i32
    %c0_i32_0 = arith.constant 0 : i32
    return %c0_i32, %1 : i32, i32
  }
  func.func @transform_1(%arg0: i32, %arg1: i32) -> (i32, i32) {
    %c1_i32 = arith.constant 1 : i32
    %0 = arith.muli %arg0, %c1_i32 : i32
    %1 = arith.addi %0, %arg1 : i32
    %c0_i32 = arith.constant 0 : i32
    %c0_i32_0 = arith.constant 0 : i32
    return %c0_i32, %1 : i32, i32
  }
  func.func @transform_2(%arg0: i32, %arg1: i32) -> (i32, i32) {
    %c0_i32 = arith.constant 0 : i32
    %c0_i32_0 = arith.constant 0 : i32
    %c0_i32_1 = arith.constant 0 : i32
    return %c0_i32, %c0_i32_0 : i32, i32
  }
  func.func @transform_3(%arg0: i32, %arg1: i32) -> (i32, i32) {
    %c0_i32 = arith.constant 0 : i32
    %c0_i32_0 = arith.constant 0 : i32
    %c0_i32_1 = arith.constant 0 : i32
    return %c0_i32, %c0_i32_0 : i32, i32
  }
  func.func @transform_4(%arg0: i32, %arg1: i32) -> (i32, i32, i32) {
    %c0_i32 = arith.constant 0 : i32
    %c0_i32_0 = arith.constant 0 : i32
    %c0_i32_1 = arith.constant 0 : i32
    return %arg0, %c0_i32, %c0_i32_0 : i32, i32, i32
  }
}

</mosaic_0001>

<bundles_post_ra>
// kernel: tpu_custom_call.1
= control target key start
LH: loop header
LB: loop body
LE: loop exit
PB: predicated region body
PF: predicated region fallthrough
CT: control target
= control target key end

     0   :  { %9 = vsyncpa [#allocation3], 0  ;;  %s561_s0 = inlined_call_operand.hbm [shape: s32[2,128], index: 0, kind: input, shape index: {}]   ;;  %s562_s1 = inlined_call_operand.hbm [shape: f32[2,128], index: 1, kind: input, shape index: {}]   ;;  %s563_s2 = inlined_call_operand.hbm [shape: f32[40,56], index: 2, kind: input, shape index: {}]   ;;  %s564_s3 = inlined_call_operand.hbm [shape: f32[40,56], index: 3, kind: input, shape index: {}]   ;;  %s565_s4 = inlined_call_operand.hbm [shape: f32[1,1,1], index: 4, kind: output, shape index: {}]  }
   0x1   :  { %10 = vsyncpa [#allocation6], 0 }
   0x2   :  { %11 = vsyncpa [#allocation9], 0  ;;  %s35_s17 = sshll.u32 %s562_s1, 4  ;;  %s36_s17 = int_to_ptr.hbm [resolvable:$true] %s35_s17 }
   0x3   :  { %12 = vsyncpa [#allocation4], 0  ;;  %s500_s18 = smov [#allocation5]   ;;  %s21_s22 = sshll.u32 %s561_s0, 4  ;;  %s22_s22 = int_to_ptr.hbm [resolvable:$true] %s21_s22 }
   0x4   :  { %s37_s19 = sshll.u32 %s500_s18, 4  ;;  %s501_s23 = smov [#allocation2]   ;;  %s38_s19 = int_to_ptr.vmem [resolvable:$true] %s37_s19 }
   0x5   :  { %40 = dma.hbm_to_vmem [thread:$0]  %s36_s17, 32, %s38_s19, [#allocation6]  }
   0x6   :  { %s23_s24 = sshll.u32 %s501_s23, 4  ;;  %s45_s27 = sshll.u32 %s563_s2, 4  ;;  %s24_s24 = int_to_ptr.vmem [resolvable:$true] %s23_s24  ;;  %s46_s27 = int_to_ptr.hbm [resolvable:$true] %s45_s27 }
   0x7   :  { %26 = dma.hbm_to_vmem [thread:$0]  %s22_s22, 32, %s24_s24, [#allocation3]  }
   0x8   :  { %s502_s1 = smov [#allocation7]   ;;  %s58_s5 = sshll.u32 %s564_s3, 4  ;;  %s59_s5 = int_to_ptr.hbm [resolvable:$true] %s58_s5 }
   0x9   :  { %s47_s28 = sshll.u32 %s502_s1, 4  ;;  %s503_s6 = smov 128   ;;  %s48_s28 = int_to_ptr.vmem [resolvable:$true] %s47_s28 }
   0xa   :  { %s504_s0 = smov 8   ;;  %s505_s7 = smov [#allocation8]  }
   0xb   :  { %53 = dma.hbm_to_vmem [thread:$0]  %s46_s27, 640, %s48_s28, [#allocation6], %s503_s6, %s503_s6, %s504_s0  }
   0xc   :  { %s60_s8 = sshll.u32 %s505_s7, 4  ;;  %s61_s8 = int_to_ptr.vmem [resolvable:$true] %s60_s8 }
   0xd   :  { %66 = dma.hbm_to_vmem [thread:$0]  %s59_s5, 640, %s61_s8, [#allocation9], %s503_s6, %s503_s6, %s504_s0  }
   0xe   :  { %492 = dma.done.wait [#allocation3], 32  }
   0xf   :  { %493 = vsyncadd [#allocation3], 4294967264 }
  0x10   :  { %494 = dma.done.wait [#allocation6], 672  }
  0x11   :  { %495 = vsyncadd [#allocation6], 4294966624 }
  0x12   :  { %496 = dma.done.wait [#allocation9], 640  }
  0x13   :  { %497 = vsyncadd [#allocation9], 4294966656  ;;  %v93_v0 = vlaneseq  ;;  %v91_v4 = vld [vmem:[#allocation2] sm:$0x3]  ;;  %v506_v9 = vmov 1.0   ;;  %v145_v12 = vld [vmem:[#allocation7] sm:$0xff] }
  0x14   :  { %v101_v5 = vperm.slane %v91_v4, 0  ;;  %v123_v6 = vperm.slane %v91_v4, 1  ;;  %vm150_vm14 = vcmask 457728   ;;  %v147_v13 = vld [vmem:[#allocation7 + $0x10] sm:$0xff]  ;;  %v198_v14 = vld [vmem:[#allocation8] sm:$0xff]  ;;  %v201_v15 = vld [vmem:[#allocation8 + $0x18] sm:$0xff] }
  0x15   :  { %v94_v1 = vshrl.u32 %v93_v0, 7  ;;  %v146_v16 = vld [vmem:[#allocation7 + $0x8] sm:$0xff]  ;;  %v148_v17 = vld [vmem:[#allocation7 + $0x18] sm:$0xff]  ;;  %v199_v18 = vld [vmem:[#allocation8 + $0x8] sm:$0xff]  ;;  %vm275_vm15 = vcmask 1040384   ;;  %v507_v54 = vmov 0.0  }
  0x16   :  { %v202_v19 = vld [vmem:[#allocation8 + $0x20] sm:$0xff]  ;;  %v149_v20 = vld [vmem:[#allocation7 + $0x20] sm:$0xff]  ;;  %v200_v21 = vld [vmem:[#allocation8 + $0x10] sm:$0xff]  ;;  %s508_s2 = smov [#allocation10]   ;;  %s297_s11 = sshll.u32 %s565_s4, 4  ;;  %s298_s11 = int_to_ptr.hbm [resolvable:$true] %s297_s11 }
  0x17   :  { %v100_v2 = vadd.s32 48, %v94_v1  ;;  %v99_v3 = vadd.s32 40, %v94_v1  ;;  %v98_v7 = vadd.s32 32, %v94_v1  ;;  %v97_v8 = vadd.s32 24, %v94_v1  ;;  %v92_v46 = vld [vmem:[#allocation5] sm:$0x3] }
  0x18   :  { %v96_v10 = vadd.s32 16, %v94_v1  ;;  %v95_v11 = vadd.s32 8, %v94_v1  ;;  %vm102_vm12 = vcmp.eq.s32.totalorder %v94_v1, %v101_v5  ;;  %vm124_vm13 = vcmp.eq.s32.totalorder %v94_v1, %v123_v6  ;;  %s295_s3 = sshll.u32 %s508_s2, 4  ;;  %s296_s3 = int_to_ptr.vmem [resolvable:$true] %s295_s3 }
  0x19   :  { %vm108_vm0 = vcmp.eq.s32.totalorder %v100_v2, %v101_v5  ;;  %vm130_vm1 = vcmp.eq.s32.totalorder %v100_v2, %v123_v6  ;;  %vm107_vm2 = vcmp.eq.s32.totalorder %v99_v3, %v101_v5  ;;  %vm129_vm3 = vcmp.eq.s32.totalorder %v99_v3, %v123_v6 }
  0x1a   :  { %323 = vmatpush.msk.msra.mxu0 %vm108_vm0, %v506_v9  ;;  %347 = vmatpush.msk.msra.mxu2 %vm108_vm0, %v506_v9  ;;  %vm106_vm4 = vcmp.eq.s32.totalorder %v98_v7, %v101_v5  ;;  %vm128_vm5 = vcmp.eq.s32.totalorder %v98_v7, %v123_v6  ;;  %vm105_vm6 = vcmp.eq.s32.totalorder %v97_v8, %v101_v5  ;;  %vm89_vm0 = vcmask 0  }
  0x1b   :  { %335 = vmatpush.msk.msra.mxu1 %vm130_vm1, %v506_v9  ;;  %354 = vmatpush.msk.msra.mxu3 %vm130_vm1, %v506_v9  ;;  %vm127_vm7 = vcmp.eq.s32.totalorder %v97_v8, %v123_v6  ;;  %vm104_vm8 = vcmp.eq.s32.totalorder %v96_v10, %v101_v5  ;;  %vm126_vm9 = vcmp.eq.s32.totalorder %v96_v10, %v123_v6 }
  0x1c   :  { %324 = vmatpush.msk.msra.mxu0 %vm107_vm2, %v506_v9  ;;  %348 = vmatpush.msk.msra.mxu2 %vm107_vm2, %v506_v9  ;;  %vm103_vm10 = vcmp.eq.s32.totalorder %v95_v11, %v101_v5  ;;  %vm125_vm11 = vcmp.eq.s32.totalorder %v95_v11, %v123_v6  ;;  %90 = vst.msk [vmem:[#allocation10] sm:$0x1] %vm89_vm0, %v507_v54 }
  0x1d   :  { %336 = vmatpush.msk.msra.mxu1 %vm129_vm3, %v506_v9  ;;  %355 = vmatpush.msk.msra.mxu3 %vm129_vm3, %v506_v9 }
  0x1e   :  { %325 = vmatpush.msk.msra.mxu0 %vm106_vm4, %v506_v9  ;;  %349 = vmatpush.msk.msra.mxu2 %vm106_vm4, %v506_v9 }
  0x1f   :  { %337 = vmatpush.msk.msra.mxu1 %vm128_vm5, %v506_v9  ;;  %356 = vmatpush.msk.msra.mxu3 %vm128_vm5, %v506_v9 }
  0x20   :  { %326 = vmatpush.msk.msra.mxu0 %vm105_vm6, %v506_v9  ;;  %350 = vmatpush.msk.msra.mxu2 %vm105_vm6, %v506_v9 }
  0x21   :  { %338 = vmatpush.msk.msra.mxu1 %vm127_vm7, %v506_v9  ;;  %357 = vmatpush.msk.msra.mxu3 %vm127_vm7, %v506_v9 }
  0x22   :  { %327 = vmatpush.msk.msra.mxu0 %vm104_vm8, %v506_v9  ;;  %351 = vmatpush.msk.msra.mxu2 %vm104_vm8, %v506_v9 }
  0x23   :  { %339 = vmatpush.msk.msra.mxu1 %vm126_vm9, %v506_v9  ;;  %358 = vmatpush.msk.msra.mxu3 %vm126_vm9, %v506_v9  ;;  %v271_v62 = vld [vmem:[#allocation10] sm:$0x1] }
  0x24   :  { %328 = vmatpush.msk.msra.mxu0 %vm103_vm10, %v506_v9  ;;  %352 = vmatpush.msk.msra.mxu2 %vm103_vm10, %v506_v9 }
  0x25   :  { %340 = vmatpush.msk.msra.mxu1 %vm125_vm11, %v506_v9  ;;  %359 = vmatpush.msk.msra.mxu3 %vm125_vm11, %v506_v9 }
  0x26   :  { %329 = vmatpush.msk.msra.mxu0 %vm102_vm12, %v506_v9  ;;  %353 = vmatpush.msk.msra.mxu2 %vm102_vm12, %v506_v9 }
  0x27   :  { %341 = vmatpush.msk.msra.mxu1 %vm124_vm13, %v506_v9  ;;  %330 = vmatmul.msk.f32.vlgmr.msra.gmra.mxu0 %vm150_vm14, %v145_v12 }
  0x28   :  { %332 = vmatmul.msk.f32.vlgmr.msra.gmra.mxu2 %vm150_vm14, %v147_v13  ;;  %342 = vmatmul.msk.f32.vlgmr.msra.gmra.mxu1 %vm150_vm14, %v198_v14 }
  0x29   :  { %360 = vmatpush.msk.msra.mxu3 %vm124_vm13, %v506_v9 }
  0x2a   :  { %345 = vmatmul.msk.f32.vlgmr.msra.gmra.mxu3 %vm150_vm14, %v201_v15 }
  0x2f   :  { %331 = vmatmul.msk.f32.gmra.mxu0 %vm150_vm14, %v146_v16 }
  0x30   :  { %333 = vmatmul.msk.f32.gmra.mxu2 %vm150_vm14, %v148_v17  ;;  %343 = vmatmul.msk.f32.gmra.mxu1 %vm150_vm14, %v199_v18 }
  0x32   :  { %346 = vmatmul.msk.f32.gmra.mxu3 %vm150_vm14, %v202_v19 }
  0x38   :  { %334 = vmatmul.msk.f32.gmra.mxu2 %vm150_vm14, %v149_v20  ;;  %344 = vmatmul.msk.f32.gmra.mxu1 %vm150_vm14, %v200_v21 }
  0xa4   :  { %v183_v22 = vpop.f32.mrf.mxu0 }
  0xa5   :  { %v235_v23 = vpop.f32.mrf.mxu1 }
  0xa6   :  { %v250_v30 = vmul.f32 %v235_v23, %v183_v22 }
  0xab   :  { %v189_v24 = vpop.f32.mrf.mxu2 }
  0xac   :  { %v186_v26 = vpop.f32.mrf.mxu0 }
  0xad   :  { %v238_v25 = vpop.f32.mrf.mxu1  ;;  %v244_v27 = vpop.f32.mrf.mxu3 }
  0xae   :  { %v251_v28 = vmul.f32 %v238_v25, %v186_v26 }
  0xb0   :  { %v255_v32 = vadd.f32 %v251_v28, %v250_v30 }
  0xb3   :  { %v192_v29 = vpop.f32.mrf.mxu2 }
  0xb4   :  { %v253_v36 = vmul.f32 %v244_v27, %v192_v29 }
  0xb5   :  { %v241_v31 = vpop.f32.mrf.mxu1  ;;  %v247_v35 = vpop.f32.mrf.mxu3 }
  0xb6   :  { %v252_v33 = vmul.f32 %v241_v31, %v189_v24 }
  0xb8   :  { %v256_v34 = vadd.f32 %v255_v32, %v252_v33 }
  0xba   :  { %v257_v39 = vadd.f32 %v256_v34, %v253_v36 }
  0xbb   :  { %v195_v37 = vpop.f32.mrf.mxu2 }
  0xbc   :  { %v254_v38 = vmul.f32 %v247_v35, %v195_v37 }
  0xbe   :  { %v258_v40 = vadd.f32 %v257_v39, %v254_v38 }
  0xc0   :  { %v259_v41 = vrot.slane %v258_v40, 4 }
  0xc2   :  { %v260_v42 = vadd.f32 %v259_v41, %v258_v40 }
  0xc4   :  { %v261_v43 = vrot.slane %v260_v42, 2 }
  0xc6   :  { %v262_v44 = vadd.f32 %v261_v43, %v260_v42 }
  0xc8   :  { %v263_v45 = vrot.slane %v262_v44, 1 }
  0xca   :  { %v264_v47 = vadd.f32 %v263_v45, %v262_v44 }
  0xcc   :  { %v265_v48 = vsub.f32 %v264_v47, %v92_v46 }
  0xce   :  { %v267_v49 = vrot.slane %v265_v48, 7 }
  0xd0   :  { %v269_v50 = vmul.f32 %v267_v49, %v92_v46 }
  0xd2   :  { %v270_v51 = vmul.f32 %v269_v50, %v267_v49 }
  0xd4   :  { %v273_v52 = vrot.slane %v270_v51, 1 }
  0xd6   :  { %v276_v53 = vsel %vm275_vm15, %v273_v52, 0.0 }
  0xd7   :  { %277 = vadd.xlane.f32.xlu0 %v276_v53 }
 0x14a   :  { %v278_v55 = vpop.xlane.xlu0 %277 }
 0x14b   :  { %v279_v56 = vrot.slane %v278_v55, 4 }
 0x14d   :  { %v280_v57 = vadd.f32 %v279_v56, %v278_v55 }
 0x14f   :  { %v281_v58 = vrot.slane %v280_v57, 2 }
 0x151   :  { %v282_v59 = vadd.f32 %v281_v58, %v280_v57 }
 0x153   :  { %v283_v60 = vrot.slane %v282_v59, 1 }
 0x155   :  { %v284_v61 = vadd.f32 %v283_v60, %v282_v59 }
 0x157   :  { %361 = vpush %v284_v61 }
 0x188   :  { %s362_s12 = spop %361 }
 0x189   :  { %v286_v63 = vstv %s362_s12 }
 0x18a   :  { %v287_v0 = vadd.f32 %v286_v63, %v271_v62 }
 0x18c   :  { %289 = vst.msk [vmem:[#allocation10] sm:$0x1] %vm89_vm0, %v287_v0 }
 0x18d   :  { %300 = dma.vmem_to_hbm [thread:$0]  %s296_s3, 16, %s298_s11, [#allocation4]  }
 0x18e   :  { %498 = dma.done.wait [#allocation4], 16  }
 0x18f   :  { %499 = vsyncadd [#allocation4], 4294967280 }
 0x190   :  { %305 = vsyncpa [#allocation3], 1 }
 0x191   :  { %306 = vsyncpa [#allocation6], 1 }
 0x192   :  { %307 = vsyncpa [#allocation9], 1 }
 0x193   :  { %308 = vsyncpa [#allocation4], 1 }

</bundles_post_ra>
